<compile_context>
chip_gen: v7x
topology: tpu7x:2x2x1
jax: 0.10.0
libtpu: 0.0.40
codegen_flags: <defaults>
</compile_context>

<pallas_src>
import jax
import jax.numpy as jnp
from jax.experimental import pallas as pl
from jax.experimental.pallas import tpu as pltpu


# ---------------------------------------------------------------------------
# Kernels
# ---------------------------------------------------------------------------
def _scale_kernel(scale_smem, x_ref, o_ref):
    """o = x * scale[b]  (lane-dense 3-D path; scale is an f32 (B,) SMEM table)."""
    b = pl.program_id(0)
    s = scale_smem[b].astype(o_ref.dtype)
    o_ref[...] = x_ref[...] * s


def _scale_add_kernel(scale_smem, x_ref, r_ref, o_ref):
    """o = residual + x * scale[b]  (fused DropPath + residual add)."""
    b = pl.program_id(0)
    s = scale_smem[b].astype(o_ref.dtype)
    o_ref[...] = r_ref[...] + x_ref[...] * s


def _scale_kernel_2d(scale_ref, x_ref, o_ref):
    """Fallback flat (B, tile_n) path; scale is a (B, 1) VMEM block (broadcast)."""
    o_ref[...] = x_ref[...] * scale_ref[...]


def _scale_add_kernel_2d(scale_ref, x_ref, r_ref, o_ref):
    o_ref[...] = r_ref[...] + x_ref[...] * scale_ref[...]


# ---------------------------------------------------------------------------
# Tiling helpers
# ---------------------------------------------------------------------------
def _sublane_multiple(itemsize):
    # 32-bit dtypes: 8 sublanes per vreg; sub-32-bit dtypes pack 2x / 4x rows.
    return {1: 32, 2: 16}.get(itemsize, 8)


def _round_down(x, m):
    return (x // m) * m


def _pick_lane_cols(n, max_cols=2048):
    """Largest multiple of 128 that divides n (capped at max_cols), or None."""
    if n % 128 != 0:
        return None
    c = _round_down(min(n, max_cols), 128)
    while c >= 128:
        if n % c == 0:
            return c
        c -= 128
    return None


def _pick_row_tile(rows, cols, itemsize, batch, target_bytes, min_steps=4):
    """Row tile: multiple of the sublane packing factor, ~target_bytes per
    streamed buffer, shrunk (when possible) so the grid has >= min_steps."""
    sub = _sublane_multiple(itemsize)
    tile = max(sub, _round_down(target_bytes // max(1, cols * itemsize), sub))
    tile = min(tile, rows)
    steps_needed = -(-min_steps // max(1, batch))          # ceil
    if steps_needed > 1:
        cap = _round_down(rows // steps_needed, sub)
        if cap >= sub:
            tile = min(tile, cap)
    if tile >= rows:
        return rows                                        # full-dim block
    return max(sub, _round_down(tile, sub))


def _pick_col_tile_2d(n, batch, itemsize, target_bytes, min_steps=4):
    """Fallback lane tile on a flat (B, N) layout; padded-footprint aware."""
    if n <= 128:
        return n
    sub = _sublane_multiple(itemsize)
    padded_b = -(-batch // sub) * sub
    tile = max(128, _round_down(target_bytes // max(1, padded_b * itemsize), 128))
    tile = min(tile, max(128, _round_down(n, 128)))
    if -(-n // tile) < min_steps:
        want = _round_down(-(-n // min_steps), 128) or 128
        tile = max(128, min(tile, want))
    return tile


def _compiler_params(n_grid_axes, streamed_tile_bytes, n_streamed):
    # Double-buffered streamed buffers + slack for Mosaic bookkeeping; cap at
    # 48 MiB so there is headroom inside v7x's 64 MiB VMEM per TensorCore.
    need = 2 * n_streamed * streamed_tile_bytes + (4 << 20)
    limit = int(min(48 << 20, max(16 << 20, need)))
    return pltpu.CompilerParams(
        dimension_semantics=("parallel",) * n_grid_axes,
        vmem_limit_bytes=limit,
    )


# ---------------------------------------------------------------------------
# Host-side per-sample scale (hoisted PRNG, matches PyTorch DropPath semantics)
# ---------------------------------------------------------------------------
def _per_sample_scale(key, batch, keep_prob):
    """mask = floor(keep_prob + U[0,1)) in {0,1};  scale = mask / keep_prob."""
    u = jax.random.uniform(key, (batch,), dtype=jnp.float32)
    return jnp.floor(keep_prob + u) * jnp.float32(1.0 / keep_prob)


# ---------------------------------------------------------------------------
# Public wrapper
# ---------------------------------------------------------------------------
def drop_path_pallas(x, key, drop_prob: float = 0.0, training: bool = False,
                     residual=None, target_tile_bytes: int = 4 << 20):
    """Pallas DropPath: y[b] = x[b] * scale_b with scale_b in {0, 1/keep_prob}.

    If `residual` is given, the residual add is fused into the same streaming
    pass (y = residual + x * scale_b), saving one full HBM read + write of the
    activation compared to running DropPath and the add as separate ops.
    """
    if drop_prob == 0.0 or not training:
        return x if residual is None else residual + x

    keep_prob = 1.0 - float(drop_prob)
    orig_shape = x.shape
    B = int(x.shape[0])
    N = 1
    for d in x.shape[1:]:
        N *= int(d)
    itemsize = jnp.dtype(x.dtype).itemsize

    scale_f32 = _per_sample_scale(key, B, keep_prob)       # (B,), f32
    n_streamed = 2 if residual is None else 3              # x (+ residual) + out

    cols = _pick_lane_cols(N)
    if cols is not None:
        # ------- primary path: lane-dense (B, rows, cols), SMEM scale --------
        rows = N // cols
        tile_r = _pick_row_tile(rows, cols, itemsize, B, target_tile_bytes)
        grid = (B, pl.cdiv(rows, tile_r))

        block = pl.BlockSpec((pl.Squeezed(), tile_r, cols),
                             lambda b, r: (b, r, 0))
        in_specs = [pl.BlockSpec(memory_space=pltpu.MemorySpace.SMEM), block]
        args = [scale_f32, x.reshape(B, rows, cols)]
        kernel = _scale_kernel
        if residual is not None:
            in_specs.append(block)
            args.append(residual.reshape(B, rows, cols))
            kernel = _scale_add_kernel

        tile_bytes = tile_r * cols * itemsize
        out = pl.pallas_call(
            kernel,
            out_shape=jax.ShapeDtypeStruct((B, rows, cols), x.dtype),
            grid=grid,
            in_specs=in_specs,
            out_specs=block,
            compiler_params=_compiler_params(2, tile_bytes, n_streamed),
            cost_estimate=pl.CostEstimate(
                flops=(n_streamed - 1) * B * N,
                transcendentals=0,
                bytes_accessed=n_streamed * B * N * itemsize + 4 * B,
            ),
            # Note: input_output_aliases={1: 0} would drop the extra HBM output
            # buffer when x is dead after the call; not used in this demo.
        )(*args)
        return out.reshape(orig_shape)

    # ------- fallback path: flat (B, N), N not a multiple of 128 -------------
    # TODO(synk): tile the batch axis in chunks of 8/16/32 when B is large; for
    # now the whole batch is one (B, tile_n) block (fine for ViT-sized B).
    tile_n = _pick_col_tile_2d(N, B, itemsize, target_tile_bytes)
    grid = (pl.cdiv(N, tile_n),)
    scale_2d = scale_f32.reshape(B, 1).astype(x.dtype)

    block = pl.BlockSpec((B, tile_n), lambda j: (0, j))
    in_specs = [pl.BlockSpec((B, 1), lambda j: (0, 0)), block]
    args = [scale_2d, x.reshape(B, N)]
    kernel = _scale_kernel_2d
    if residual is not None:
        in_specs.append(block)
        args.append(residual.reshape(B, N))
        kernel = _scale_add_kernel_2d

    sub = _sublane_multiple(itemsize)
    padded_b = -(-B // sub) * sub
    tile_bytes = padded_b * tile_n * itemsize
    out = pl.pallas_call(
        kernel,
        out_shape=jax.ShapeDtypeStruct((B, N), x.dtype),
        grid=grid,
        in_specs=in_specs,
        out_specs=block,
        compiler_params=_compiler_params(1, tile_bytes, n_streamed),
        cost_estimate=pl.CostEstimate(
            flops=(n_streamed - 1) * B * N,
            transcendentals=0,
            bytes_accessed=n_streamed * B * N * itemsize + B * itemsize,
        ),
    )(*args)
    return out.reshape(orig_shape)


class DropPath:
    """Minimal stateless analogue of the PyTorch DropPath module."""

    def __init__(self, drop_prob=None):
        self.drop_prob = 0.0 if drop_prob is None else float(drop_prob)

    def __call__(self, x, *, key, training: bool = False, residual=None):
        return drop_path_pallas(x, key, self.drop_prob, training, residual)


# ---------------------------------------------------------------------------
# Pure-JAX reference (same hoisted PRNG -> exact match for f32)
# ---------------------------------------------------------------------------
def _drop_path_ref(x, key, drop_prob, training, residual=None):
    if drop_prob == 0.0 or not training:
        return x if residual is None else residual + x
    scale = _per_sample_scale(key, x.shape[0], 1.0 - drop_prob)
    scale = scale.reshape((x.shape[0],) + (1,) * (x.ndim - 1)).astype(x.dtype)
    y = x * scale
    return y if residual is None else residual + y


if __name__ == "__main__":
    root = jax.random.PRNGKey(0)
    kx, kmask, kres = jax.random.split(root, 3)

    B, S, D = 2, 8, 32
    drop_prob = 0.3
    keep_prob = 1.0 - drop_prob
    x = jax.random.normal(kx, (B, S, D), dtype=jnp.float32)

    # 1) Training forward (primary lane-dense path).
    y = jax.block_until_ready(drop_path_pallas(x, kmask, drop_prob, training=True))
    y_ref = _drop_path_ref(x, kmask, drop_prob, True)
    assert jnp.allclose(y, y_ref, rtol=1e-6, atol=1e-6)

    # Each sample is either fully dropped or scaled by exactly 1/keep_prob.
    for b in range(B):
        dropped = bool(jnp.allclose(y[b], 0.0))
        scaled = bool(jnp.allclose(y[b], x[b] / keep_prob, rtol=1e-5, atol=1e-6))
        assert dropped or scaled

    # 2) Eval mode / drop_prob == 0 -> identity (PyTorch semantics).
    y_eval = jax.block_until_ready(drop_path_pallas(x, kmask, drop_prob, training=False))
    assert jnp.allclose(y_eval, x)

    # 3) Fused DropPath + residual add (main HBM-traffic optimization).
    res = jax.random.normal(kres, (B, S, D), dtype=jnp.float32)
    y_fused = jax.block_until_ready(
        drop_path_pallas(x, kmask, drop_prob, training=True, residual=res))
    assert jnp.allclose(y_fused, res + y_ref, rtol=1e-6, atol=1e-6)

    # 4) Fallback path: feature count not a multiple of 128.
    x_odd = jax.random.normal(kx, (B, S, 20), dtype=jnp.float32)
    y_odd = jax.block_until_ready(drop_path_pallas(x_odd, kmask, drop_prob, training=True))
    assert jnp.allclose(y_odd, _drop_path_ref(x_odd, kmask, drop_prob, True),
                        rtol=1e-6, atol=1e-6)

    # 5) bf16 input with a multi-step (batch x row-tiles) grid.
    x_big = jax.random.normal(kx, (2, 256, 256), dtype=jnp.bfloat16)
    y_big = jax.block_until_ready(drop_path_pallas(x_big, kmask, drop_prob, training=True))
    y_big_ref = _drop_path_ref(x_big, kmask, drop_prob, True)
    assert jnp.allclose(y_big.astype(jnp.float32), y_big_ref.astype(jnp.float32),
                        rtol=2e-2, atol=2e-2)

    print("KERNEL_OK")
</pallas_src>

<mosaic_0001>
module attributes {stable_mosaic.version = 11 : i64} {
  func.func @_scale_kernel(%arg0: i32, %arg1: i32, %arg2: memref<2xf32, #tpu.memory_space<smem>>, %arg3: memref<1x1x256xf32, #tpu.memory_space<vmem>>, %arg4: memref<1x1x256xf32, #tpu.memory_space<vmem>>) attributes {dimension_semantics = [#tpu.dimension_semantics<parallel>, #tpu.dimension_semantics<parallel>], iteration_bounds = array<i64: 2, 1>, scalar_prefetch = 0 : i64, scratch_operands = 0 : i64, tpu.core_type = #tpu.core_type<tc>, window_params = [{transform_indices = @transform_0, window_bounds = array<i64: 2>}, {transform_indices = @transform_1, window_bounds = array<i64: 1, 1, 256>}, {transform_indices = @transform_2, window_bounds = array<i64: 1, 1, 256>}]} {
    %0 = arith.index_cast %arg0 : i32 to index
    %1 = memref.load %arg2[%0] : memref<2xf32, #tpu.memory_space<smem>>
    %c0 = arith.constant 0 : index
    %c0_0 = arith.constant 0 : index
    %c0_1 = arith.constant 0 : index
    %2 = vector.load %arg3[%c0, %c0_0, %c0_1] : memref<1x1x256xf32, #tpu.memory_space<vmem>>, vector<1x1x256xf32>
    %3 = vector.shape_cast %2 : vector<1x1x256xf32> to vector<1x256xf32>
    %4 = vector.broadcast %1 : f32 to vector<1x256xf32>
    %5 = arith.mulf %3, %4 : vector<1x256xf32>
    %c0_2 = arith.constant 0 : index
    %c0_3 = arith.constant 0 : index
    %c0_4 = arith.constant 0 : index
    %6 = vector.load %arg4[%c0_2, %c0_3, %c0_4] : memref<1x1x256xf32, #tpu.memory_space<vmem>>, vector<1x1x256xf32>
    %7 = vector.shape_cast %6 : vector<1x1x256xf32> to vector<1x256xf32>
    %8 = vector.shape_cast %5 : vector<1x256xf32> to vector<1x1x256xf32>
    tpu.vector_store %arg4[%c0_2, %c0_3, %c0_4], %8 {strides = array<i32>} : memref<1x1x256xf32, #tpu.memory_space<vmem>>, vector<1x1x256xf32>,
    return
  }
  func.func @transform_0(%arg0: i32, %arg1: i32) -> i32 {
    %c0_i32 = arith.constant 0 : i32
    %c0_i32_0 = arith.constant 0 : i32
    return %c0_i32 : i32
  }
  func.func @transform_1(%arg0: i32, %arg1: i32) -> (i32, i32, i32) {
    %c0_i32 = arith.constant 0 : i32
    %c0_i32_0 = arith.constant 0 : i32
    return %arg0, %arg1, %c0_i32 : i32, i32, i32
  }
  func.func @transform_2(%arg0: i32, %arg1: i32) -> (i32, i32, i32) {
    %c0_i32 = arith.constant 0 : i32
    %c0_i32_0 = arith.constant 0 : i32
    return %arg0, %arg1, %c0_i32 : i32, i32, i32
  }
}

</mosaic_0001>

<bundles_post_ra>
// kernel: tpu_custom_call.1
= control target key start
LH: loop header
LB: loop body
LE: loop exit
PB: predicated region body
PF: predicated region fallthrough
CT: control target
= control target key end

     0   :  { %7 = vsyncpa [#allocation5], 0  ;;  %s780_s0 = inlined_call_operand.hbm [shape: f32[2], index: 0, kind: input, shape index: {}]   ;;  %s781_s1 = inlined_call_operand.hbm [shape: f32[2,1,256], index: 1, kind: input, shape index: {}]   ;;  %s782_s2 = inlined_call_operand.hbm [shape: f32[2,1,256], index: 2, kind: output, shape index: {}]  }
   0x1   :  { %8 = vsyncpa [#allocation3], 0 }
   0x2   :  { %10 = vsyncpa [#allocation3 + $0x1], 0 }
   0x3   :  { %11 = vsyncpa [#allocation4], 0 }
   0x4   :  { %13 = vsyncpa [#allocation4 + $0x1], 0  ;;  %s553_s9 = smov 0   ;;  %s555_s10 = smov 0  }
   0x5   :  { %s557_s11 = smov 0   ;;  %s559_s12 = smov 0  }
   0x6   :  { %s561_s13 = smov 0   ;;  %s563_s14 = smov 0  }
   0x7 LB: > { %s312_s15 = sadd.s32 4294967295, %s533_s14   ;;  %s313_s16 = sadd.s32 4294967294, %s533_s14   ;;  %s533_s14 = sphi %s563_s14, %s19_s14   ;;  %s529_s13 = sphi %s561_s13, %s806_s13   ;;  %s525_s12 = sphi %s559_s12, %s805_s12   ;;  %s521_s11 = sphi %s557_s11, %s804_s11   ;;  %s517_s10 = sphi %s555_s10, %s803_s10   ;;  %s513_s9 = sphi %s553_s9, %s802_s9  }
   0x8   : > { %p74_p0 = scmp.ne.s32.totalorder %s517_s10, %s513_s9  ;;  %p587_p1 = scmp.eq.s32.totalorder %s312_s15, 0 }
   0x9   : > { %p591_p2 = scmp.eq.s32.totalorder %s312_s15, 1  ;;  %p106_p3 = scmp.eq.s32.totalorder %s313_s16, 1 }
   0xa   : > { %s787_s17 = scalar_select %p587_p1, 1, 0 }
   0xb   : > { %p597_p4 = por %p587_p1, %p74_p0  ;;  %p314_p5 = scmp.ge.s32.totalorder %s533_s14, 1 }
   0xc   : > { %p602_p6 = por %p106_p3, %p74_p0  ;;  %p113_p7 = scmp.lt.s32.totalorder %s533_s14, 3 }
   0xd   : > { %s789_s19 = scalar_select %p597_p4, 1, 0 }
   0xe   : > { %s790_s20 = scalar_select %p602_p6, 1, 0 }
   0xf   : > { %p607_p8 = pnand %p314_p5, %p113_p7  ;;  %s31_s22 = sadd.s32 1, %s529_s13 }
  0x10   : > { %p621_p12 = scmp.ge.s32.totalorder %s31_s22, 2  ;;  %s61_s25 = sadd.s32 1, %s521_s11 }
  0x11   : > { %p339_p10 = pneg %p607_p8  ;;  %p68_p13 = scmp.ne.s32.totalorder %s521_s11, %s517_s10 }
  0x12   : > { %p69_p0 = scmp.eq.s32.totalorder %s533_s14, 0  ;;  %s404_s28 = scalar_lea.hbm %s780_s0, 16 }
  0x13   : > { %p617_p11 = pnand %p339_p10, %p587_p1  ;;  %p405_p3 = scmp.ne.s32.totalorder %s780_s0, %s404_s28 }
  0x14   : > { %p411_p9 = scmp.lt.u32.totalorder %s404_s28, %s780_s0 }
  0x15   : > { %p406_p5 = pneg %p617_p11 }
  0x17   : > { %p407_p7 = pnand %p406_p5, %p405_p3 }
  0x19   : > { %p408_p10 = pneg %p407_p7 }
  0x1b   : > { %p413_p6 = pnand %p411_p9, %p408_p10 }
  0x1d   : > { %416 = shalt.err (!%p413_p6)
}
  0x1e   : > { %s535_s5 = smov [#allocation2]   ;;  %s808_s22 = smov (%p621_p12, %s31_s22), 0 }
  0x1f   : > { %342 = dma.hbm_to_smem (!%p617_p11), %s780_s0, 16, %s535_s5, [#allocation5]  }
  0x20   : > { %p652_p6 = por %p69_p0, %p68_p13  ;;  %p661_p9 = por %p591_p2, %p68_p13 }
  0x21   : > { %s56_s16 = ssub.s32 %s529_s13, %s808_s22  ;;  %p352_p3 = scmp.lt.s32.totalorder %s533_s14, 2 }
  0x22   : > { %s795_s15 = scalar_select %p661_p9, 1, 0 }
  0x23   : > { %p59_p5 = scmp.eq.s32.totalorder %s56_s16, 0  ;;  %s135_s23 = sand.u32 1, %s521_s11  }
  0x24   : > { %s317_s24 = sshll.u32 %s135_s23, 1  ;;  %s329_s27 = sshll.u32 %s529_s13, 5 }
  0x25   : > { %s670_s26 = scalar_select %p59_p5, %s521_s11, %s61_s25  }
  0x26   : > { %s676_s30 = scalar_lea.hbm %s781_s1, %s329_s27  ;;  %s139_s18 = scalar_lea.vmem [#allocation6], %s317_s24 }
  0x27   : > { %s149_s3 = sshll.u32 %s139_s18, 4  ;;  %p682_p2 = pnand %p352_p3, %p652_p6  ;;  %s678_s3 = int_to_ptr.vmem [resolvable:$true] %s149_s3 }
  0x28   : > { %s136_s25 = scalar_lea.sflag [#allocation3], %s135_s23  ;;  %s417_s5 = scalar_lea.hbm %s676_s30, 32 }
  0x29   : > { %p418_p11 = scmp.ne.s32.totalorder %s676_s30, %s417_s5  ;;  %p419_p12 = pneg %p682_p2 }
  0x2a   : > { %s422_s16 = scalar_lea.hbm %s781_s1, 64  ;;  %p423_p7 = scmp.lt.u32.totalorder %s676_s30, %s781_s1 }
  0x2b   : > { %p420_p13 = pnand %p419_p12, %p418_p11  ;;  %p424_p10 = scmp.lt.u32.totalorder %s422_s16, %s417_s5 }
  0x2c   : > { %p426_p3 = scmp.lt.u32.totalorder %s417_s5, %s676_s30 }
  0x2d   : > { %p421_p0 = pneg %p420_p13  ;;  %p425_p6 = por %p424_p10, %p423_p7 }
  0x2f   : > { %p427_p5 = por %p426_p3, %p425_p6 }
  0x31   : > { %p428_p9 = pnand %p427_p5, %p421_p0 }
  0x33   : > { %431 = shalt.err (!%p428_p9)
}
  0x34   : > { %s432_s23 = scalar_lea.vmem %s678_s3, 32  ;;  %s536_s27 = smov [#allocation6]  }
  0x35   : > { %p433_p11 = scmp.ne.s32.totalorder %s678_s3, %s432_s23  ;;  %s437_s28 = sshll.u32 %s536_s27, 4  ;;  %s438_s28 = int_to_ptr.vmem [resolvable:$false] %s437_s28 }
  0x36   : > { %s439_s29 = scalar_lea.vmem %s438_s28, 64  ;;  %p440_p1 = scmp.lt.s32.totalorder %s678_s3, %s438_s28 }
  0x37   : > { %p435_p13 = pnand %p433_p11, %p419_p12  ;;  %p441_p7 = scmp.lt.s32.totalorder %s439_s29, %s432_s23 }
  0x39   : > { %p436_p4 = pneg %p435_p13  ;;  %p442_p10 = por %p441_p7, %p440_p1 }
  0x3b   : > { %p443_p6 = pnand %p442_p10, %p436_p4 }
  0x3d   : > { %446 = shalt.err (!%p443_p6)
}
  0x3e   : > { %346 = dma.hbm_to_vmem [thread:$0]  (!%p682_p2), %s676_s30, 32, %s678_s3, %s136_s25  }
  0x3f   : > { %158 = sbr.rel (%p607_p8) target bundleno = 103 (0x67), region = 28  ;;  %p797_p9 = scmp.ne.s32.totalorder (!%p607_p8), %s787_s17, 0 }
  0x46   : > { %500 = dma.done.wait (%p797_p9), [#allocation5], 16  }
  0x47   : > { %502 = vsyncadd (%p797_p9), [#allocation5], 4294967280  ;;  %s718_s18 = sand.u32 1, %s517_s10   ;;  %p798_p1 = scmp.ne.s32.totalorder %s789_s19, 0 }
  0x48   : > { %s322_s5 = sshll.u32 %s718_s18, 1  ;;  %s165_s4 = scalar_lea.sflag [#allocation3], %s718_s18 }
  0x49   : > { %s168_s6 = scalar_lea.vmem [#allocation6], %s322_s5 }
  0x4a   : > { %504 = dma.done.wait (%p798_p1), %s165_s4, 32  }
  0x4b   : > { %506 = vsyncadd (%p798_p1), %s165_s4, 4294967264 }
  0x4c   : > { %173 = sfence }
  0x4d   : > { %s190_s17 = sld [smem:[#allocation2 + %s525_s12]]  ;;  %v194_v0 = vlaneseq  ;;  %v191_v1 = vld [vmem:[%s168_s6] sm:$0x3]  ;;  %s189_s21 = scalar_lea.vmem [#allocation7], %s322_s5 }
  0x4e   : > { %s216_s30 = sshll.u32 %s189_s21, 4  ;;  %s330_s3 = sshll.u32 %s525_s12, 5  ;;  %s728_s30 = int_to_ptr.vmem [resolvable:$true] %s216_s30 }
  0x4f   : > { %vm196_vm0 = vcmp.lt.s32.totalorder %v194_v0, 256  ;;  %s733_s19 = scalar_lea.hbm %s782_s2, %s330_s3  ;;  %s200_s16 = scalar_lea.sflag [#allocation4], %s718_s18 }
  0x50   : > { %s447_s8 = scalar_lea.vmem %s728_s30, 32  ;;  %p799_p8 = scmp.ne.s32.totalorder %s795_s15, 0 }
  0x51   : > { %p448_p4 = scmp.ne.s32.totalorder %s728_s30, %s447_s8  ;;  %s537_s12 = smov [#allocation7]  }
  0x52   : > { %s451_s24 = sshll.u32 %s537_s12, 4  ;;  %s452_s24 = int_to_ptr.vmem [resolvable:$false] %s451_s24 }
  0x53   : > { %v192_v2 = vstv %s190_s17  ;;  %p449_p2 = pnand %p448_p4, %p799_p8  ;;  %s453_s23 = scalar_lea.vmem %s452_s24, 64 }
  0x54   : > { %v193_v3 = vmul.f32 %v192_v2, %v191_v1  ;;  %p454_p0 = scmp.lt.s32.totalorder %s728_s30, %s452_s24  ;;  %p455_p3 = scmp.lt.s32.totalorder %s453_s23, %s447_s8 }
  0x55   : > { %p450_p12 = pneg %p449_p2 }
  0x56   : > { %198 = vst.msk [vmem:[%s189_s21] sm:$0x3] %vm196_vm0, %v193_v3  ;;  %p456_p5 = por %p455_p3, %p454_p0 }
  0x58   : > { %p457_p11 = pnand %p456_p5, %p450_p12 }
  0x5a   : > { %460 = shalt.err (!%p457_p11)
}
  0x5b   : > { %s461_s27 = scalar_lea.hbm %s733_s19, 32  ;;  %s465_s18 = scalar_lea.hbm %s782_s2, 64 }
  0x5c   : > { %p462_p13 = scmp.ne.s32.totalorder %s733_s19, %s461_s27  ;;  %p466_p6 = scmp.lt.u32.totalorder %s733_s19, %s782_s2 }
  0x5d   : > { %p467_p9 = scmp.lt.u32.totalorder %s465_s18, %s461_s27  ;;  %p469_p4 = scmp.lt.u32.totalorder %s461_s27, %s733_s19 }
  0x5e   : > { %p463_p7 = pnand %p462_p13, %p799_p8 }
  0x5f   : > { %p468_p1 = por %p467_p9, %p466_p6 }
  0x60   : > { %p464_p10 = pneg %p463_p7 }
  0x61   : > { %p470_p2 = por %p469_p4, %p468_p1 }
  0x63   : > { %p471_p12 = pnand %p470_p2, %p464_p10 }
  0x65   : > { %474 = shalt.err (!%p471_p12)
}
  0x66   : > { %337 = dma.vmem_to_hbm [thread:$0]  (%p799_p8), %s728_s30, 32, %s733_s19, %s200_s16  }
  0x67 PF: > { %s228_s6 = sand.u32 1, %s513_s9   ;;  %p800_p0 = scmp.ne.s32.totalorder %s790_s20, 0 }
  0x68   : > { %p801_p3 = scmp.ge.s32.totalorder %s533_s14, 2  ;;  %s229_s17 = scalar_lea.sflag [#allocation4], %s228_s6 }
  0x6a   : > { %p348_p5 = pnand %p801_p3, %p800_p0 }
  0x6c   : > { %508 = dma.done.wait (!%p348_p5), %s229_s17, 32  }
  0x6d   : > { %510 = vsyncadd (!%p348_p5), %s229_s17, 4294967264  ;;  %s19_s14 = sadd.s32 1, %s533_s14   ;;  %s802_s9 = smov %s517_s10 }
  0x6e   : > { %p16_p11 = scmp.ge.s32.totalorder %s19_s14, 4   ;;  %s803_s10 = smov %s521_s11 }
  0x6f   : > { %s804_s11 = smov %s670_s26  ;;  %s805_s12 = smov %s529_s13 }
  0x70   : > { %s806_s13 = smov %s808_s22  ;;  %18 = sbr.rel (!%p16_p11) target bundleno = 7 (0x7), region = 78 }
  0x77   :  { %234 = vsyncpa [#allocation3], 1 }
  0x78   :  { %236 = vsyncpa [#allocation3 + $0x1], 1 }
  0x79   :  { %237 = vsyncpa [#allocation4], 1 }
  0x7a   :  { %239 = vsyncpa [#allocation4 + $0x1], 1 }
  0x7b   :  { %240 = vsyncpa [#allocation5], 1 }
  0x7c   :  { %242 = vsyncpa [#allocation5 + $0x1], 1 }

</bundles_post_ra>
